<compile_context>
chip_gen: v7x
topology: tpu7x:2x2x1
jax: 0.10.0
libtpu: 0.0.40
codegen_flags: <defaults>
</compile_context>

<pallas_src>
import functools
import math

import jax
import jax.numpy as jnp
from jax.experimental import pallas as pl
from jax.experimental.pallas import tpu as pltpu


def _pick_tile(total, target, align):
    """Largest divisor of `total` <= target that is a multiple of `align`.
    Falls back to `total` (full extent also satisfies the (8,128) rule)."""
    if total <= target:
        return total
    for cand in range(min(target, total), align - 1, -1):
        if total % cand == 0 and cand % align == 0:
            return cand
    return total


# ---------------------------------------------------------------------------
# Kernel A: fused QKV projection (pure bf16 GEMM, scale pre-folded into weight)
# ---------------------------------------------------------------------------
def qkv_proj_kernel(x_ref, w_ref, o_ref):
    # x_ref: (tt, d_in) bf16, w_ref: (d_in, tn) bf16, o_ref: (tt, tn) bf16
    o_ref[...] = jnp.dot(x_ref[...], w_ref[...],
                         preferred_element_type=jnp.float32).astype(o_ref.dtype)


# ---------------------------------------------------------------------------
# Kernel B: flash attention (online softmax) + fused output projection
# ---------------------------------------------------------------------------
def flash_attn_kernel(q_ref, k_ref, v_ref, wo_ref, bo_ref, o_ref,
                      m_scr, l_scr, acc_scr, out_acc, *, tq, tk):
    qi = pl.program_id(1)
    h = pl.program_id(2)
    ki = pl.program_id(3)
    nh = pl.num_programs(2)
    nk = pl.num_programs(3)

    NEG_BIG = -1e30  # large finite negative: avoids -inf/NaN corner cases

    @pl.when(ki == 0)
    def _init():
        m_scr[...] = jnp.full_like(m_scr, NEG_BIG)
        l_scr[...] = jnp.zeros_like(l_scr)
        acc_scr[...] = jnp.zeros_like(acc_scr)

    def _accumulate(apply_mask):
        q = q_ref[...]                              # (tq, hd) bf16, pre-scaled
        k = k_ref[...]                              # (tk, hd) bf16
        v = v_ref[...]                              # (tk, hd) bf16
        # scores: contract both operands on their last dim (no k.T relayout)
        s = jax.lax.dot_general(q, k, (((1,), (1,)), ((), ())),
                                preferred_element_type=jnp.float32)   # (tq, tk)
        if apply_mask:
            # diagonal block only; tq == tk so global offsets cancel (col > row)
            row = jax.lax.broadcasted_iota(jnp.int32, (tq, tk), 0)
            col = jax.lax.broadcasted_iota(jnp.int32, (tq, tk), 1)
            s = jnp.where(col > row, NEG_BIG, s)
        m_prev = m_scr[...]                                            # (tq, 1)
        m_new = jnp.maximum(m_prev, jnp.max(s, axis=-1, keepdims=True))
        alpha = jnp.exp(m_prev - m_new)
        p = jnp.exp(s - m_new)                                         # (tq, tk)
        l_scr[...] = alpha * l_scr[...] + jnp.sum(p, axis=-1, keepdims=True)
        acc_scr[...] = alpha * acc_scr[...] + jnp.dot(
            p.astype(jnp.bfloat16), v, preferred_element_type=jnp.float32)
        m_scr[...] = m_new

    # Causal block skipping: blocks with ki > qi are fully masked (tq == tk).
    @pl.when(ki == qi)
    def _diag():
        _accumulate(apply_mask=True)

    @pl.when(ki < qi)
    def _offdiag():
        _accumulate(apply_mask=False)

    @pl.when(ki == nk - 1)
    def _finalize():
        inv_l = pl.reciprocal(l_scr[...], approx=True)        # EUP slot, ~free
        ctx = (acc_scr[...] * inv_l).astype(jnp.bfloat16)      # (tq, hd)
        # partial output projection for this head: ctx_h @ Wo[h*hd:(h+1)*hd, :]
        part = jnp.dot(ctx, wo_ref[...],
                       preferred_element_type=jnp.float32)     # (tq, d_out) fp32

        @pl.when(h == 0)
        def _():
            out_acc[...] = part

        @pl.when(h > 0)
        def _():
            out_acc[...] = out_acc[...] + part

        @pl.when(h == nh - 1)
        def _():
            o_ref[...] = (out_acc[...] + bo_ref[...]).astype(o_ref.dtype)


# ---------------------------------------------------------------------------
# Wrapper
# ---------------------------------------------------------------------------
def multi_head_attention(x, wq, wk, wv, wo, bo, *, num_heads):
    """Causal MHA. x: (B,T,d_in); wq/wk/wv: (d_in,d_out); wo: (d_out,d_out); bo: (d_out,)."""
    B, T, d_in = x.shape
    d_out = wq.shape[1]
    assert d_out % num_heads == 0
    hd = d_out // num_heads
    scale = 1.0 / math.sqrt(hd)

    # --- bf16 at the HBM boundary; fold 1/sqrt(hd) into the Q weight columns ---
    x_bf = x.astype(jnp.bfloat16)
    wqkv = jnp.concatenate([wq * scale, wk, wv], axis=1).astype(jnp.bfloat16)
    wo_bf = wo.astype(jnp.bfloat16)
    bo2 = bo.reshape(1, d_out).astype(jnp.float32)

    # ---- Kernel A: fused QKV projection ------------------------------------
    tt = _pick_tile(T, 256, 8)                  # seq tile
    tn = _pick_tile(3 * d_out, 768, 128)        # N tile of the concatenated weight
    qkv = pl.pallas_call(
        qkv_proj_kernel,
        out_shape=jax.ShapeDtypeStruct((B, T, 3 * d_out), jnp.bfloat16),
        grid_spec=pltpu.PrefetchScalarGridSpec(
            num_scalar_prefetch=0,
            grid=(B, T // tt, (3 * d_out) // tn),
            in_specs=[
                pl.BlockSpec((None, tt, d_in), lambda b, t, n: (b, t, 0)),
                pl.BlockSpec((d_in, tn), lambda b, t, n: (0, n)),
            ],
            out_specs=pl.BlockSpec((None, tt, tn), lambda b, t, n: (b, t, n)),
        ),
        compiler_params=pltpu.CompilerParams(
            dimension_semantics=("parallel", "parallel", "parallel")),
    )(x_bf, wqkv)

    # ---- Kernel B: flash attention + fused output projection ---------------
    tq = tk = _pick_tile(T, 256, 8)
    assert T % tq == 0 and tq == tk  # block-skip condition (ki <= qi) requires tq == tk

    wo_spec = pl.BlockSpec((hd, d_out), lambda b, qi, h, ki: (h, 0))
    bo_spec = pl.BlockSpec((1, d_out), lambda b, qi, h, ki: (0, 0))
    out_spec = pl.BlockSpec((None, tq, d_out), lambda b, qi, h, ki: (b, qi, 0))
    scratch = [
        pltpu.VMEM((tq, 1), jnp.float32),       # running max  m
        pltpu.VMEM((tq, 1), jnp.float32),       # running sum  l
        pltpu.VMEM((tq, hd), jnp.float32),      # running weighted sum of V
        pltpu.VMEM((tq, d_out), jnp.float32),   # fp32 out-proj accumulator across heads
    ]

    if hd % 128 == 0:
        # Direct head indexing out of the (B, T, 3*d_out) qkv buffer:
        # no head-major transpose HBM pass.  K/V index clamped -> no dead DMA.
        H = num_heads
        q_spec = pl.BlockSpec((None, tq, hd), lambda b, qi, h, ki: (b, qi, h))
        k_spec = pl.BlockSpec(
            (None, tk, hd), lambda b, qi, h, ki: (b, jnp.minimum(ki, qi), H + h))
        v_spec = pl.BlockSpec(
            (None, tk, hd), lambda b, qi, h, ki: (b, jnp.minimum(ki, qi), 2 * H + h))
        qkv_args = (qkv, qkv, qkv)
    else:
        # hd < 128: head-major layout plumbing in bf16 (plain XLA, outside kernels).
        q, k, v = jnp.split(qkv, 3, axis=-1)

        def to_heads(t):                        # (B,T,d_out) -> (B,H,T,hd)
            return t.reshape(B, T, num_heads, hd).transpose(0, 2, 1, 3)

        q_spec = pl.BlockSpec((None, None, tq, hd),
                              lambda b, qi, h, ki: (b, h, qi, 0))
        k_spec = pl.BlockSpec((None, None, tk, hd),
                              lambda b, qi, h, ki: (b, h, jnp.minimum(ki, qi), 0))
        v_spec = pl.BlockSpec((None, None, tk, hd),
                              lambda b, qi, h, ki: (b, h, jnp.minimum(ki, qi), 0))
        qkv_args = (to_heads(q), to_heads(k), to_heads(v))

    out = pl.pallas_call(
        functools.partial(flash_attn_kernel, tq=tq, tk=tk),
        out_shape=jax.ShapeDtypeStruct((B, T, d_out), x.dtype),
        grid_spec=pltpu.PrefetchScalarGridSpec(
            num_scalar_prefetch=0,
            grid=(B, T // tq, num_heads, T // tk),
            in_specs=[q_spec, k_spec, v_spec, wo_spec, bo_spec],
            out_specs=out_spec,
            scratch_shapes=scratch,
        ),
        compiler_params=pltpu.CompilerParams(
            dimension_semantics=("parallel", "parallel", "arbitrary", "arbitrary")),
    )(*qkv_args, wo_bf, bo2)

    return out


# ---------------------------------------------------------------------------
# Pure-JAX reference (mirrors the PyTorch forward; dropout = identity)
# ---------------------------------------------------------------------------
def reference_mha(x, wq, wk, wv, wo, bo, *, num_heads):
    B, T, d_in = x.shape
    d_out = wq.shape[1]
    hd = d_out // num_heads
    q = (x @ wq).reshape(B, T, num_heads, hd).transpose(0, 2, 1, 3)
    k = (x @ wk).reshape(B, T, num_heads, hd).transpose(0, 2, 1, 3)
    v = (x @ wv).reshape(B, T, num_heads, hd).transpose(0, 2, 1, 3)
    scores = jnp.einsum("bhqd,bhkd->bhqk", q, k) / math.sqrt(hd)
    mask = jnp.triu(jnp.ones((T, T), dtype=bool), k=1)
    scores = jnp.where(mask, -jnp.inf, scores)
    w = jax.nn.softmax(scores, axis=-1)
    ctx = jnp.einsum("bhqk,bhkd->bhqd", w, v).transpose(0, 2, 1, 3).reshape(B, T, d_out)
    return ctx @ wo + bo


if __name__ == "__main__":
    # Small shapes consistent with the module's forward.
    B, T, d_in = 2, 8, 32
    d_out, num_heads = 32, 4

    key = jax.random.PRNGKey(0)
    kx, k1, k2, k3, k4, k5 = jax.random.split(key, 6)
    x = jax.random.normal(kx, (B, T, d_in), dtype=jnp.float32)

    # Deterministic PyTorch-Linear-like init; weights stored pre-transposed as
    # (in_features, out_features). qkv_bias=False; out_proj has bias.
    def init_w(k, fan_in, shape):
        bound = 1.0 / math.sqrt(fan_in)
        return jax.random.uniform(k, shape, jnp.float32, -bound, bound)

    wq = init_w(k1, d_in, (d_in, d_out))
    wk = init_w(k2, d_in, (d_in, d_out))
    wv = init_w(k3, d_in, (d_in, d_out))
    wo = init_w(k4, d_out, (d_out, d_out))
    bo = init_w(k5, d_out, (d_out,))

    out = multi_head_attention(x, wq, wk, wv, wo, bo, num_heads=num_heads)
    out = jax.block_until_ready(out)

    ref = reference_mha(x, wq, wk, wv, wo, bo, num_heads=num_heads)
    assert out.shape == (B, T, d_out)
    # bf16 storage / MXU inputs with fp32 accumulation -> bf16-level tolerance.
    assert jnp.allclose(out, ref, atol=5e-2, rtol=5e-2), "mismatch vs reference"

    print("KERNEL_OK")
</pallas_src>

<mosaic_0001>
module attributes {stable_mosaic.version = 11 : i64} {
  func.func @qkv_proj_kernel(%arg0: i32, %arg1: i32, %arg2: i32, %arg3: memref<1x8x32xbf16, #tpu.memory_space<vmem>>, %arg4: memref<32x96xbf16, #tpu.memory_space<vmem>>, %arg5: memref<1x8x96xbf16, #tpu.memory_space<vmem>>) attributes {dimension_semantics = [#tpu.dimension_semantics<parallel>, #tpu.dimension_semantics<parallel>, #tpu.dimension_semantics<parallel>], iteration_bounds = array<i64: 2, 1, 1>, scalar_prefetch = 0 : i64, scratch_operands = 0 : i64, tpu.core_type = #tpu.core_type<tc>, window_params = [{transform_indices = @transform_0, window_bounds = array<i64: 1, 8, 32>}, {transform_indices = @transform_1, window_bounds = array<i64: 32, 96>}, {transform_indices = @transform_2, window_bounds = array<i64: 1, 8, 96>}]} {
    %c0 = arith.constant 0 : index
    %c0_0 = arith.constant 0 : index
    %c0_1 = arith.constant 0 : index
    %0 = vector.load %arg3[%c0, %c0_0, %c0_1] : memref<1x8x32xbf16, #tpu.memory_space<vmem>>, vector<1x8x32xbf16>
    %1 = vector.shape_cast %0 : vector<1x8x32xbf16> to vector<8x32xbf16>
    %c0_2 = arith.constant 0 : index
    %c0_3 = arith.constant 0 : index
    %2 = vector.load %arg4[%c0_2, %c0_3] : memref<32x96xbf16, #tpu.memory_space<vmem>>, vector<32x96xbf16>
    %cst = arith.constant dense<0.000000e+00> : vector<8x96xf32>
    %3 = tpu.matmul %1, %2, %cst {dimension_numbers = #tpu.dot_dimension_numbers<[1], [0], [0], [1], [0, 0, 1, 1], [], []>} : vector<8x32xbf16>, vector<32x96xbf16>, vector<8x96xf32> -> vector<8x96xf32>
    %4 = arith.truncf %3 : vector<8x96xf32> to vector<8x96xbf16>
    %c0_4 = arith.constant 0 : index
    %c0_5 = arith.constant 0 : index
    %c0_6 = arith.constant 0 : index
    %5 = vector.load %arg5[%c0_4, %c0_5, %c0_6] : memref<1x8x96xbf16, #tpu.memory_space<vmem>>, vector<1x8x96xbf16>
    %6 = vector.shape_cast %5 : vector<1x8x96xbf16> to vector<8x96xbf16>
    %7 = vector.shape_cast %4 : vector<8x96xbf16> to vector<1x8x96xbf16>
    tpu.vector_store %arg5[%c0_4, %c0_5, %c0_6], %7 {strides = array<i32>} : memref<1x8x96xbf16, #tpu.memory_space<vmem>>, vector<1x8x96xbf16>,
    return
  }
  func.func @transform_0(%arg0: i32, %arg1: i32, %arg2: i32) -> (i32, i32, i32) {
    %c0_i32 = arith.constant 0 : i32
    %c0_i32_0 = arith.constant 0 : i32
    return %arg0, %arg1, %c0_i32 : i32, i32, i32
  }
  func.func @transform_1(%arg0: i32, %arg1: i32, %arg2: i32) -> (i32, i32) {
    %c0_i32 = arith.constant 0 : i32
    %c0_i32_0 = arith.constant 0 : i32
    return %c0_i32, %arg2 : i32, i32
  }
  func.func @transform_2(%arg0: i32, %arg1: i32, %arg2: i32) -> (i32, i32, i32) {
    %c0_i32 = arith.constant 0 : i32
    return %arg0, %arg1, %arg2 : i32, i32, i32
  }
}

</mosaic_0001>

<bundles_post_ra>
// kernel: tpu_custom_call.1
= control target key start
LH: loop header
LB: loop body
LE: loop exit
PB: predicated region body
PF: predicated region fallthrough
CT: control target
= control target key end

     0   :  { %7 = vsyncpa [#allocation3], 0  ;;  %s874_s0 = inlined_call_operand.hbm [shape: bf16[2,8,32], index: 0, kind: input, shape index: {}]   ;;  %s875_s1 = inlined_call_operand.hbm [shape: bf16[32,96], index: 1, kind: input, shape index: {}]   ;;  %s876_s2 = inlined_call_operand.hbm [shape: bf16[2,8,96], index: 2, kind: output, shape index: {}]  }
   0x1   :  { %9 = vsyncpa [#allocation3 + $0x1], 0 }
   0x2   :  { %10 = vsyncpa [#allocation6], 0 }
   0x3   :  { %11 = vsyncpa [#allocation4], 0 }
   0x4   :  { %13 = vsyncpa [#allocation4 + $0x1], 0  ;;  %s660_s9 = smov 0   ;;  %s662_s10 = smov 0  }
   0x5   :  { %s664_s11 = smov 0   ;;  %s666_s12 = smov 0  }
   0x6   :  { %s668_s13 = smov 0   ;;  %s670_s14 = smov 0  }
   0x7 LB: > { %s384_s15 = sadd.s32 4294967295, %s636_s14   ;;  %s385_s16 = sadd.s32 4294967294, %s636_s14   ;;  %s636_s14 = sphi %s670_s14, %s19_s14   ;;  %s632_s13 = sphi %s668_s13, %s900_s13   ;;  %s628_s12 = sphi %s666_s12, %s899_s12   ;;  %s624_s11 = sphi %s664_s11, %s898_s11   ;;  %s620_s10 = sphi %s662_s10, %s897_s10   ;;  %s616_s9 = sphi %s660_s9, %s896_s9  }
   0x8   : > { %p60_p0 = scmp.ne.s32.totalorder %s620_s10, %s616_s9  ;;  %p694_p1 = scmp.eq.s32.totalorder %s384_s15, 0 }
   0x9   : > { %p698_p2 = scmp.eq.s32.totalorder %s384_s15, 1  ;;  %p120_p3 = scmp.eq.s32.totalorder %s385_s16, 1 }
   0xa   : > { %s881_s17 = scalar_select %p694_p1, 1, 0 }
   0xb   : > { %s882_s18 = scalar_select %p698_p2, 1, 0 }
   0xc   : > { %p704_p4 = por %p694_p1, %p60_p0  ;;  %p386_p5 = scmp.ge.s32.totalorder %s636_s14, 1 }
   0xd   : > { %p709_p6 = por %p120_p3, %p60_p0  ;;  %p127_p7 = scmp.lt.s32.totalorder %s636_s14, 3 }
   0xe   : > { %s883_s19 = scalar_select %p704_p4, 1, 0 }
   0xf   : > { %s884_s20 = scalar_select %p709_p6, 1, 0 }
  0x10   : > { %p714_p8 = pnand %p386_p5, %p127_p7  ;;  %s638_s22 = smov [#allocation5]  }
  0x11   : > { %s141_s23 = sshll.u32 %s638_s22, 4  ;;  %s38_s25 = sadd.s32 1, %s632_s13  ;;  %s142_s23 = int_to_ptr.vmem [resolvable:$true] %s141_s23 }
  0x12   : > { %s885_s21 = scalar_select %p714_p8, 1, 0 }
  0x13   : > { %p421_p9 = pneg %p714_p8  ;;  %s492_s28 = scalar_lea.hbm %s875_s1, 256 }
  0x14   : > { %p493_p12 = scmp.ne.s32.totalorder %s875_s1, %s492_s28  ;;  %p499_p5 = scmp.lt.u32.totalorder %s492_s28, %s875_s1 }
  0x15   : > { %p723_p11 = pnand %p421_p9, %p694_p1 }
  0x17   : > { %p494_p13 = pneg %p723_p11 }
  0x19   : > { %p495_p0 = pnand %p494_p13, %p493_p12 }
  0x1b   : > { %p496_p3 = pneg %p495_p0 }
  0x1d   : > { %p501_p7 = pnand %p499_p5, %p496_p3 }
  0x1f   : > { %504 = shalt.err (!%p501_p7)
}
  0x20   : > { %s505_s5 = scalar_lea.vmem %s142_s23, 256  ;;  %p513_p1 = scmp.lt.s32.totalorder %s142_s23, %s142_s23 }
  0x21   : > { %p506_p9 = scmp.ne.s32.totalorder %s142_s23, %s505_s5  ;;  %p514_p4 = scmp.lt.s32.totalorder %s505_s5, %s505_s5 }
  0x23   : > { %p508_p10 = pnand %p506_p9, %p494_p13  ;;  %p515_p8 = por %p514_p4, %p513_p1 }
  0x25   : > { %p509_p6 = pneg %p508_p10 }
  0x27   : > { %p516_p2 = pnand %p515_p8, %p509_p6 }
  0x29   : > { %519 = shalt.err (!%p516_p2)
}
  0x2a   : > { %s639_s6 = smov 64   ;;  %s640_s7 = smov 4  }
  0x2b   : > { %424 = dma.hbm_to_vmem [thread:$0]  (!%p723_p11), %s875_s1, 256, %s142_s23, [#allocation6], %s639_s6, %s639_s6, %s640_s7  }
  0x2c   : > { %p40_p1 = scmp.ge.s32.totalorder %s38_s25, 2  ;;  %s47_s16 = sadd.s32 1, %s624_s11 }
  0x2d   : > { %p54_p2 = scmp.ne.s32.totalorder %s624_s11, %s620_s10  ;;  %p55_p4 = scmp.eq.s32.totalorder %s636_s14, 0 }
  0x2e   : > { %s902_s25 = smov (%p40_p1, %s38_s25), 0  ;;  %p888_p8 = scmp.ne.s32.totalorder %s882_s18, 0 }
  0x2f   : > { %p750_p6 = por %p55_p4, %p54_p2  ;;  %s42_s24 = ssub.s32 %s632_s13, %s902_s25 }
  0x30   : > { %p756_p10 = por %p888_p8, %p54_p2  ;;  %p434_p12 = scmp.lt.s32.totalorder %s636_s14, 2 }
  0x31   : > { %p45_p11 = scmp.eq.s32.totalorder %s42_s24, 0  ;;  %s155_s23 = sand.u32 1, %s624_s11  }
  0x32   : > { %s389_s27 = sshll.u32 %s155_s23, 2  ;;  %s390_s29 = sshll.u32 %s632_s13, 6 }
  0x33   : > { %s765_s28 = scalar_select %p45_p11, %s624_s11, %s47_s16  }
  0x34   : > { %s771_s4 = scalar_lea.hbm %s874_s0, %s390_s29  ;;  %s159_s18 = scalar_lea.vmem [#allocation2], %s389_s27 }
  0x35   : > { %s167_s5 = sshll.u32 %s159_s18, 4  ;;  %p777_p13 = pnand %p434_p12, %p750_p6  ;;  %s773_s5 = int_to_ptr.vmem [resolvable:$true] %s167_s5 }
  0x36   : > { %s156_s7 = scalar_lea.sflag [#allocation3], %s155_s23  ;;  %s520_s8 = scalar_lea.hbm %s771_s4, 64 }
  0x37   : > { %p521_p0 = scmp.ne.s32.totalorder %s771_s4, %s520_s8  ;;  %p522_p3 = pneg %p777_p13 }
  0x38   : > { %s525_s24 = scalar_lea.hbm %s874_s0, 128  ;;  %p526_p9 = scmp.lt.u32.totalorder %s771_s4, %s874_s0 }
  0x39   : > { %p523_p5 = pnand %p522_p3, %p521_p0  ;;  %p527_p1 = scmp.lt.u32.totalorder %s525_s24, %s520_s8 }
  0x3a   : > { %p529_p4 = scmp.lt.u32.totalorder %s520_s8, %s771_s4 }
  0x3b   : > { %p524_p7 = pneg %p523_p5  ;;  %p528_p2 = por %p527_p1, %p526_p9 }
  0x3d   : > { %p530_p6 = por %p529_p4, %p528_p2 }
  0x3f   : > { %p531_p8 = pnand %p530_p6, %p524_p7 }
  0x41   : > { %534 = shalt.err (!%p531_p8)
}
  0x42   : > { %s535_s23 = scalar_lea.vmem %s773_s5, 64  ;;  %s641_s29 = smov [#allocation2]  }
  0x43   : > { %p536_p12 = scmp.ne.s32.totalorder %s773_s5, %s535_s23  ;;  %s540_s30 = sshll.u32 %s641_s29, 4  ;;  %s541_s30 = int_to_ptr.vmem [resolvable:$false] %s540_s30 }
  0x44   : > { %s542_s3 = scalar_lea.vmem %s541_s30, 128  ;;  %p543_p5 = scmp.lt.s32.totalorder %s773_s5, %s541_s30 }
  0x45   : > { %p538_p11 = pnand %p536_p12, %p522_p3  ;;  %p544_p9 = scmp.lt.s32.totalorder %s542_s3, %s535_s23 }
  0x47   : > { %p539_p0 = pneg %p538_p11  ;;  %p545_p1 = por %p544_p9, %p543_p5 }
  0x49   : > { %p546_p2 = pnand %p545_p1, %p539_p0 }
  0x4b   : > { %549 = shalt.err (!%p546_p2)
}
  0x4c   : > { %428 = dma.hbm_to_vmem [thread:$0]  (!%p777_p13), %s771_s4, 64, %s773_s5, %s156_s7  }
  0x4d   : > { %p891_p7 = scmp.ne.s32.totalorder %s885_s21, 0 }
  0x4e   : > { %s809_s18 = sand.u32 (!%p891_p7), 1, %s620_s10   ;;  %p892_p3 = scmp.ne.s32.totalorder (!%p891_p7), %s883_s19, 0 }
  0x4f   : > { %176 = sbr.rel (%p891_p7) target bundleno = 327 (0x147), region = 28  ;;  %s392_s8 = sshll.u32 (!%p891_p7), %s809_s18, 2 }
  0x50   : > { %s179_s15 = scalar_lea.sflag (!%p891_p7), [#allocation3], %s809_s18  ;;  %s182_s16 = scalar_lea.vmem (!%p891_p7), [#allocation2], %s392_s8 }
  0x56   : > { %603 = dma.done.wait (%p892_p3), %s179_s15, 64  }
  0x57   : > { %605 = vsyncadd (%p892_p3), %s179_s15, 4294967232  ;;  %p893_p4 = scmp.ne.s32.totalorder %s881_s17, 0 }
  0x59   : > { %607 = dma.done.wait (%p893_p4), [#allocation6], 256  }
  0x5a   : > { %609 = vsyncadd (%p893_p4), [#allocation6], 4294967040  ;;  %v642_v0 = vmov 0.0   ;;  %vm643_vm0 = vmmov 0   ;;  %v490_v1 = vld [vmem:[#allocation5] sm:$0xff]   ;;  %v491_v2 = vld [vmem:[#allocation5 + $0x8] sm:$0xff]  }
  0x5b   : > { %405 = vmatprep.subr.bf16.mxu0 %v642_v0  ;;  %409 = vmatprep.mubr.msk.bf16.mxu0 %vm643_vm0, %v642_v0  ;;  %v208_v3 = vld [vmem:[%s182_s16] sm:$0xf]  ;;  %vm225_vm1 = vcmask 261120   ;;  %s399_s19 = sshll.u32 %s628_s12, 6  ;;  %s206_s21 = scalar_lea.vmem [#allocation7], %s392_s8  ;;  %vm270_vm2 = vcmask 781312  }
  0x5c   : > { %406 = vmatpush3.bf16.msra.mxu0 %v490_v1  ;;  %s288_s4 = sshll.u32 %s206_s21, 4  ;;  %s825_s6 = scalar_lea.hbm %s876_s2, %s399_s19  ;;  %s827_s4 = int_to_ptr.vmem [resolvable:$true] %s288_s4 }
  0x5d   : > { %407 = vmatprep.subr.bf16.mxu0 %v642_v0  ;;  %s273_s12 = scalar_lea.sflag [#allocation4], %s809_s18  ;;  %s550_s7 = scalar_lea.vmem %s827_s4, 64 }
  0x5e   : > { %p551_p13 = scmp.ne.s32.totalorder %s827_s4, %s550_s7  ;;  %s644_s24 = smov [#allocation7]  }
  0x5f   : > { %s554_s22 = sshll.u32 %s644_s24, 4  ;;  %s555_s22 = int_to_ptr.vmem [resolvable:$false] %s554_s22 }
  0x60   : > { %408 = vmatpush3.bf16.msra.mxu0 %v491_v2  ;;  %p552_p6 = pnand %p551_p13, %p756_p10  ;;  %s556_s27 = scalar_lea.vmem %s555_s22, 128 }
  0x61   : > { %p557_p12 = scmp.lt.s32.totalorder %s827_s4, %s555_s22  ;;  %p558_p11 = scmp.lt.s32.totalorder %s556_s27, %s550_s7 }
  0x62   : > { %p553_p8 = pneg %p552_p6 }
  0x63   : > { %410 = vmatmul.mubr.msk.bf16.vlgmr.msra.gmra.mrb[0].mxu0 %vm225_vm1, %v208_v3  ;;  %p559_p0 = por %p558_p11, %p557_p12 }
  0x65   : > { %p560_p5 = pnand %p559_p0, %p553_p8 }
 0x136   : > { %v263_v4 = vpop.f32.mrb[0].mxu0 }
 0x137   : > { %v269_v5 = vpack.c.bf16 %v263_v4, %v263_v4  ;;  %v411_v6 = vpop.f32.mrb[1].mxu0 }
 0x138   : > { %v266_v7 = vpop.f32.mrb[2].mxu0 }
 0x139   : > { %v412_v8 = vpop.f32.mrb[3].mxu0  ;;  %271 = vst.msk [vmem:[%s206_s21] sm:$0xf] %vm270_vm2, %v269_v5 }
 0x13a   : > { %563 = shalt.err (!%p560_p5)
}
 0x13b   : > { %s564_s23 = scalar_lea.hbm %s825_s6, 64  ;;  %s568_s3 = scalar_lea.hbm %s876_s2, 128 }
 0x13c   : > { %p565_p9 = scmp.ne.s32.totalorder %s825_s6, %s564_s23  ;;  %p569_p7 = scmp.lt.u32.totalorder %s825_s6, %s876_s2 }
 0x13d   : > { %p570_p3 = scmp.lt.u32.totalorder %s568_s3, %s564_s23  ;;  %p572_p13 = scmp.lt.u32.totalorder %s564_s23, %s825_s6 }
 0x13e   : > { %p566_p1 = pnand %p565_p9, %p756_p10 }
 0x13f   : > { %p571_p4 = por %p570_p3, %p569_p7 }
 0x140   : > { %p567_p2 = pneg %p566_p1 }
 0x141   : > { %p573_p6 = por %p572_p13, %p571_p4 }
 0x143   : > { %p574_p8 = pnand %p573_p6, %p567_p2 }
 0x145   : > { %577 = shalt.err (!%p574_p8)
}
 0x146   : > { %419 = dma.vmem_to_hbm [thread:$0]  (%p756_p10), %s827_s4, 64, %s825_s6, %s273_s12  }
 0x147 PF: > { %s300_s15 = sand.u32 1, %s616_s9   ;;  %p894_p12 = scmp.ne.s32.totalorder %s884_s20, 0 }
 0x148   : > { %p895_p11 = scmp.ge.s32.totalorder %s636_s14, 2  ;;  %s301_s16 = scalar_lea.sflag [#allocation4], %s300_s15 }
 0x14a   : > { %p430_p0 = pnand %p895_p11, %p894_p12 }
 0x14c   : > { %611 = dma.done.wait (!%p430_p0), %s301_s16, 64  }
 0x14d   : > { %613 = vsyncadd (!%p430_p0), %s301_s16, 4294967232  ;;  %s19_s14 = sadd.s32 1, %s636_s14   ;;  %s896_s9 = smov %s620_s10 }
 0x14e   : > { %p16_p5 = scmp.ge.s32.totalorder %s19_s14, 4   ;;  %s897_s10 = smov %s624_s11 }
 0x14f   : > { %s898_s11 = smov %s765_s28  ;;  %s899_s12 = smov %s632_s13 }
 0x150   : > { %s900_s13 = smov %s902_s25  ;;  %18 = sbr.rel (!%p16_p5) target bundleno = 7 (0x7), region = 78 }
 0x157   :  { %306 = vsyncpa [#allocation3], 1 }
 0x158   :  { %308 = vsyncpa [#allocation3 + $0x1], 1 }
 0x159   :  { %309 = vsyncpa [#allocation6], 1 }
 0x15a   :  { %310 = vsyncpa [#allocation4], 1 }
 0x15b   :  { %312 = vsyncpa [#allocation4 + $0x1], 1 }

</bundles_post_ra>
